<compile_context>
chip_gen: v7x
topology: tpu7x:2x2x1
jax: 0.10.0
libtpu: 0.0.40
codegen_flags: <defaults>
</compile_context>

<pallas_src>
import functools

import jax
import jax.numpy as jnp
from jax.experimental import pallas as pl
from jax.experimental.pallas import tpu as pltpu

HID = 100      # true hidden width of the PyTorch module
PAD = 128      # padded hidden width (lane-aligned)
IN_DIM = 1     # true input feature dim
OUT_DIM = 1    # true output feature dim
MAX_TILE_M = 512  # batch tile (0.25 MiB of f32 activations per live tile)


def _silu(v):
    return v * jax.nn.sigmoid(v)


def mlp_kernel(x_ref,
               w1_ref, b1_ref,
               w2_ref, b2_ref,
               w3_ref, b3_ref,
               w4_ref, b4_ref,
               w5_ref, b5_ref,
               o_ref):
    # x tile: (TILE_M, 1) f32.
    x = x_ref[...]

    # Layer 1: Linear(1, 100) is a rank-1 broadcast, not a matmul.
    # (TILE_M, 1) * (1, PAD) + (1, PAD) -> (TILE_M, PAD), all on the VPU.
    h = _silu(x * w1_ref[...] + b1_ref[...])

    # Layers 2-4: real 128x128 matmuls; bf16 operands, f32 accumulation on MXU.
    for w_ref, b_ref in ((w2_ref, b2_ref), (w3_ref, b3_ref), (w4_ref, b4_ref)):
        acc = jnp.dot(h.astype(jnp.bfloat16), w_ref[...],
                      preferred_element_type=jnp.float32)
        h = _silu(acc + b_ref[...])

    # Output layer: Linear(100, 1) as a lane reduction (padded lanes of w5 are 0).
    o_ref[...] = jnp.sum(h * w5_ref[...], axis=-1, keepdims=True) + b5_ref[...]


def _round_up(a, m):
    return ((a + m - 1) // m) * m


def init_params(key):
    """Deterministic init mimicking torch.nn.Linear defaults:
    U(-1/sqrt(fan_in), 1/sqrt(fan_in)). Weights stored transposed as (in, out)."""
    dims = [(IN_DIM, HID), (HID, HID), (HID, HID), (HID, HID), (HID, OUT_DIM)]
    params = []
    for (fan_in, fan_out) in dims:
        key, kw, kb = jax.random.split(key, 3)
        bound = 1.0 / jnp.sqrt(jnp.float32(fan_in))
        w = jax.random.uniform(kw, (fan_in, fan_out), jnp.float32, -bound, bound)
        b = jax.random.uniform(kb, (fan_out,), jnp.float32, -bound, bound)
        params.append((w, b))
    return params


def prepare_params(params):
    """Pad / transpose / cast raw (in, out) weights into kernel layout.

    Returns the flat tuple of arrays fed to the kernel (after x):
      w1_row (1,PAD) f32, b1 (1,PAD) f32,
      w2 (PAD,PAD) bf16,  b2 (1,PAD) f32,
      w3 (PAD,PAD) bf16,  b3 (1,PAD) f32,
      w4 (PAD,PAD) bf16,  b4 (1,PAD) f32,
      w5_row (1,PAD) f32, b5 (1,1) f32
    """
    (w1, b1), (w2, b2), (w3, b3), (w4, b4), (w5, b5) = params

    def pad_bias_row(b):
        return jnp.zeros((1, PAD), jnp.float32).at[0, :b.shape[0]].set(b)

    def pad_square_bf16(w):
        wp = jnp.zeros((PAD, PAD), jnp.float32).at[:w.shape[0], :w.shape[1]].set(w)
        return wp.astype(jnp.bfloat16)

    w1_row = jnp.zeros((1, PAD), jnp.float32).at[0, :HID].set(w1[0])       # (1,100) -> (1,128)
    w5_row = jnp.zeros((1, PAD), jnp.float32).at[0, :HID].set(w5[:, 0])    # (100,1) -> (1,128)
    b5_s = b5.reshape(1, 1).astype(jnp.float32)

    return (w1_row, pad_bias_row(b1),
            pad_square_bf16(w2), pad_bias_row(b2),
            pad_square_bf16(w3), pad_bias_row(b3),
            pad_square_bf16(w4), pad_bias_row(b4),
            w5_row, b5_s)


@jax.jit
def net_forward(x, prepped):
    """x: (N, 1) float32 -> (N, 1) float32."""
    n = x.shape[0]
    tile_m = min(MAX_TILE_M, _round_up(max(n, 1), 8))
    n_pad = _round_up(n, tile_m)
    grid_m = n_pad // tile_m

    # Zero-pad batch only (no 128x lane inflation of the 1-feature input).
    x_pad = jnp.zeros((n_pad, IN_DIM), jnp.float32).at[:n, :].set(x)

    batch_spec = pl.BlockSpec((tile_m, 1), lambda i: (i, 0))
    const_row = pl.BlockSpec((1, PAD), lambda i: (0, 0))
    const_sq = pl.BlockSpec((PAD, PAD), lambda i: (0, 0))
    const_scalar = pl.BlockSpec((1, 1), lambda i: (0, 0))

    in_specs = [
        batch_spec,                 # x
        const_row, const_row,       # w1_row, b1
        const_sq, const_row,        # w2, b2
        const_sq, const_row,        # w3, b3
        const_sq, const_row,        # w4, b4
        const_row, const_scalar,    # w5_row, b5
    ]

    # Rough cost hint: 3 real matmuls + elementwise, 4 sigmoids, tiny I/O + weights.
    cost = pl.CostEstimate(
        flops=int(2 * 3 * n_pad * PAD * PAD + 10 * n_pad * PAD),
        transcendentals=int(4 * n_pad * PAD),
        bytes_accessed=int(n_pad * 4 * (IN_DIM + OUT_DIM)
                           + 3 * PAD * PAD * 2 + 7 * PAD * 4),
    )

    out = pl.pallas_call(
        mlp_kernel,
        out_shape=jax.ShapeDtypeStruct((n_pad, OUT_DIM), jnp.float32),
        grid=(grid_m,),
        in_specs=in_specs,
        out_specs=pl.BlockSpec((tile_m, 1), lambda i: (i, 0)),
        compiler_params=pltpu.CompilerParams(
            dimension_semantics=("parallel",)),
        cost_estimate=cost,
    )(x_pad, *prepped)

    return out[:n, :]


def reference_forward(x, params):
    """Pure-f32 JAX reference (same math as the PyTorch module)."""
    h = x
    for (w, b) in params[:-1]:
        h = jax.nn.silu(h @ w + b)
    w, b = params[-1]
    return h @ w + b


if __name__ == "__main__":
    key = jax.random.PRNGKey(0)
    kx, kp = jax.random.split(key)

    # Small deterministic input consistent with Linear(1, 100): (batch, 1)
    x = jax.random.normal(kx, (8, 1), jnp.float32)

    params = init_params(kp)
    prepped = prepare_params(params)

    y = net_forward(x, prepped)
    y = jax.block_until_ready(y)

    y_ref = reference_forward(x, params)
    assert y.shape == (8, 1), y.shape
    # Loose tolerance: layers 2-4 use bf16 MXU operands (f32 accumulation).
    assert jnp.allclose(y, y_ref, atol=3e-2, rtol=3e-2), (y, y_ref)

    print("KERNEL_OK")
</pallas_src>

<mosaic_0001>
module attributes {stable_mosaic.version = 11 : i64} {
  func.func @mlp_kernel(%arg0: i32, %arg1: memref<8x1xf32, #tpu.memory_space<vmem>>, %arg2: memref<1x128xf32, #tpu.memory_space<vmem>>, %arg3: memref<1x128xf32, #tpu.memory_space<vmem>>, %arg4: memref<128x128xbf16, #tpu.memory_space<vmem>>, %arg5: memref<1x128xf32, #tpu.memory_space<vmem>>, %arg6: memref<128x128xbf16, #tpu.memory_space<vmem>>, %arg7: memref<1x128xf32, #tpu.memory_space<vmem>>, %arg8: memref<128x128xbf16, #tpu.memory_space<vmem>>, %arg9: memref<1x128xf32, #tpu.memory_space<vmem>>, %arg10: memref<1x128xf32, #tpu.memory_space<vmem>>, %arg11: memref<1x1xf32, #tpu.memory_space<vmem>>, %arg12: memref<8x1xf32, #tpu.memory_space<vmem>>) attributes {dimension_semantics = [#tpu.dimension_semantics<parallel>], iteration_bounds = array<i64: 1>, scalar_prefetch = 0 : i64, scratch_operands = 0 : i64, tpu.core_type = #tpu.core_type<tc>, window_params = [{transform_indices = @transform_0, window_bounds = array<i64: 8, 1>}, {pipeline_mode = #tpu.pipeline_mode<synchronous>, transform_indices = @transform_1, window_bounds = array<i64: 1, 128>}, {pipeline_mode = #tpu.pipeline_mode<synchronous>, transform_indices = @transform_2, window_bounds = array<i64: 1, 128>}, {pipeline_mode = #tpu.pipeline_mode<synchronous>, transform_indices = @transform_3, window_bounds = array<i64: 128, 128>}, {pipeline_mode = #tpu.pipeline_mode<synchronous>, transform_indices = @transform_4, window_bounds = array<i64: 1, 128>}, {pipeline_mode = #tpu.pipeline_mode<synchronous>, transform_indices = @transform_5, window_bounds = array<i64: 128, 128>}, {pipeline_mode = #tpu.pipeline_mode<synchronous>, transform_indices = @transform_6, window_bounds = array<i64: 1, 128>}, {pipeline_mode = #tpu.pipeline_mode<synchronous>, transform_indices = @transform_7, window_bounds = array<i64: 128, 128>}, {pipeline_mode = #tpu.pipeline_mode<synchronous>, transform_indices = @transform_8, window_bounds = array<i64: 1, 128>}, {pipeline_mode = #tpu.pipeline_mode<synchronous>, transform_indices = @transform_9, window_bounds = array<i64: 1, 128>}, {pipeline_mode = #tpu.pipeline_mode<synchronous>, transform_indices = @transform_10, window_bounds = array<i64: 1, 1>}, {transform_indices = @transform_11, window_bounds = array<i64: 8, 1>}]} {
    %c0 = arith.constant 0 : index
    %c0_0 = arith.constant 0 : index
    %0 = vector.load %arg1[%c0, %c0_0] : memref<8x1xf32, #tpu.memory_space<vmem>>, vector<8x1xf32>
    %c0_1 = arith.constant 0 : index
    %c0_2 = arith.constant 0 : index
    %1 = vector.load %arg2[%c0_1, %c0_2] : memref<1x128xf32, #tpu.memory_space<vmem>>, vector<1x128xf32>
    %2 = vector.broadcast %0 : vector<8x1xf32> to vector<8x128xf32>
    %3 = vector.broadcast %1 : vector<1x128xf32> to vector<8x128xf32>
    %4 = arith.mulf %2, %3 : vector<8x128xf32>
    %c0_3 = arith.constant 0 : index
    %c0_4 = arith.constant 0 : index
    %5 = vector.load %arg3[%c0_3, %c0_4] : memref<1x128xf32, #tpu.memory_space<vmem>>, vector<1x128xf32>
    %6 = vector.broadcast %5 : vector<1x128xf32> to vector<8x128xf32>
    %7 = arith.addf %4, %6 : vector<8x128xf32>
    %8 = arith.negf %7 : vector<8x128xf32>
    %9 = math.exp %8 : vector<8x128xf32>
    %cst = arith.constant 1.000000e+00 : f32
    %10 = vector.broadcast %cst : f32 to vector<8x128xf32>
    %11 = arith.addf %10, %9 : vector<8x128xf32>
    %12 = arith.divf %10, %11 : vector<8x128xf32>
    %13 = arith.mulf %7, %12 : vector<8x128xf32>
    %14 = arith.truncf %13 : vector<8x128xf32> to vector<8x128xbf16>
    %c0_5 = arith.constant 0 : index
    %c0_6 = arith.constant 0 : index
    %15 = vector.load %arg4[%c0_5, %c0_6] : memref<128x128xbf16, #tpu.memory_space<vmem>>, vector<128x128xbf16>
    %cst_7 = arith.constant dense<0.000000e+00> : vector<8x128xf32>
    %16 = tpu.matmul %14, %15, %cst_7 {dimension_numbers = #tpu.dot_dimension_numbers<[1], [0], [0], [1], [0, 0, 1, 1], [], []>} : vector<8x128xbf16>, vector<128x128xbf16>, vector<8x128xf32> -> vector<8x128xf32>
    %c0_8 = arith.constant 0 : index
    %c0_9 = arith.constant 0 : index
    %17 = vector.load %arg5[%c0_8, %c0_9] : memref<1x128xf32, #tpu.memory_space<vmem>>, vector<1x128xf32>
    %18 = vector.broadcast %17 : vector<1x128xf32> to vector<8x128xf32>
    %19 = arith.addf %16, %18 : vector<8x128xf32>
    %20 = arith.negf %19 : vector<8x128xf32>
    %21 = math.exp %20 : vector<8x128xf32>
    %cst_10 = arith.constant 1.000000e+00 : f32
    %22 = vector.broadcast %cst_10 : f32 to vector<8x128xf32>
    %23 = arith.addf %22, %21 : vector<8x128xf32>
    %24 = arith.divf %22, %23 : vector<8x128xf32>
    %25 = arith.mulf %19, %24 : vector<8x128xf32>
    %26 = arith.truncf %25 : vector<8x128xf32> to vector<8x128xbf16>
    %c0_11 = arith.constant 0 : index
    %c0_12 = arith.constant 0 : index
    %27 = vector.load %arg6[%c0_11, %c0_12] : memref<128x128xbf16, #tpu.memory_space<vmem>>, vector<128x128xbf16>
    %cst_13 = arith.constant dense<0.000000e+00> : vector<8x128xf32>
    %28 = tpu.matmul %26, %27, %cst_13 {dimension_numbers = #tpu.dot_dimension_numbers<[1], [0], [0], [1], [0, 0, 1, 1], [], []>} : vector<8x128xbf16>, vector<128x128xbf16>, vector<8x128xf32> -> vector<8x128xf32>
    %c0_14 = arith.constant 0 : index
    %c0_15 = arith.constant 0 : index
    %29 = vector.load %arg7[%c0_14, %c0_15] : memref<1x128xf32, #tpu.memory_space<vmem>>, vector<1x128xf32>
    %30 = vector.broadcast %29 : vector<1x128xf32> to vector<8x128xf32>
    %31 = arith.addf %28, %30 : vector<8x128xf32>
    %32 = arith.negf %31 : vector<8x128xf32>
    %33 = math.exp %32 : vector<8x128xf32>
    %cst_16 = arith.constant 1.000000e+00 : f32
    %34 = vector.broadcast %cst_16 : f32 to vector<8x128xf32>
    %35 = arith.addf %34, %33 : vector<8x128xf32>
    %36 = arith.divf %34, %35 : vector<8x128xf32>
    %37 = arith.mulf %31, %36 : vector<8x128xf32>
    %38 = arith.truncf %37 : vector<8x128xf32> to vector<8x128xbf16>
    %c0_17 = arith.constant 0 : index
    %c0_18 = arith.constant 0 : index
    %39 = vector.load %arg8[%c0_17, %c0_18] : memref<128x128xbf16, #tpu.memory_space<vmem>>, vector<128x128xbf16>
    %cst_19 = arith.constant dense<0.000000e+00> : vector<8x128xf32>
    %40 = tpu.matmul %38, %39, %cst_19 {dimension_numbers = #tpu.dot_dimension_numbers<[1], [0], [0], [1], [0, 0, 1, 1], [], []>} : vector<8x128xbf16>, vector<128x128xbf16>, vector<8x128xf32> -> vector<8x128xf32>
    %c0_20 = arith.constant 0 : index
    %c0_21 = arith.constant 0 : index
    %41 = vector.load %arg9[%c0_20, %c0_21] : memref<1x128xf32, #tpu.memory_space<vmem>>, vector<1x128xf32>
    %42 = vector.broadcast %41 : vector<1x128xf32> to vector<8x128xf32>
    %43 = arith.addf %40, %42 : vector<8x128xf32>
    %44 = arith.negf %43 : vector<8x128xf32>
    %45 = math.exp %44 : vector<8x128xf32>
    %cst_22 = arith.constant 1.000000e+00 : f32
    %46 = vector.broadcast %cst_22 : f32 to vector<8x128xf32>
    %47 = arith.addf %46, %45 : vector<8x128xf32>
    %48 = arith.divf %46, %47 : vector<8x128xf32>
    %49 = arith.mulf %43, %48 : vector<8x128xf32>
    %c0_23 = arith.constant 0 : index
    %c0_24 = arith.constant 0 : index
    %50 = vector.load %arg10[%c0_23, %c0_24] : memref<1x128xf32, #tpu.memory_space<vmem>>, vector<1x128xf32>
    %51 = vector.broadcast %50 : vector<1x128xf32> to vector<8x128xf32>
    %52 = arith.mulf %49, %51 : vector<8x128xf32>
    %cst_25 = arith.constant dense<0.000000e+00> : vector<8xf32>
    %53 = vector.multi_reduction <add>, %52, %cst_25 [1] : vector<8x128xf32> to vector<8xf32>
    %54 = vector.shape_cast %53 : vector<8xf32> to vector<8x1xf32>
    %c0_26 = arith.constant 0 : index
    %c0_27 = arith.constant 0 : index
    %55 = vector.load %arg11[%c0_26, %c0_27] : memref<1x1xf32, #tpu.memory_space<vmem>>, vector<1x1xf32>
    %56 = vector.broadcast %55 : vector<1x1xf32> to vector<8x1xf32>
    %57 = arith.addf %54, %56 : vector<8x1xf32>
    %c0_28 = arith.constant 0 : index
    %c0_29 = arith.constant 0 : index
    %58 = vector.load %arg12[%c0_28, %c0_29] : memref<8x1xf32, #tpu.memory_space<vmem>>, vector<8x1xf32>
    tpu.vector_store %arg12[%c0_28, %c0_29], %57 {strides = array<i32>} : memref<8x1xf32, #tpu.memory_space<vmem>>, vector<8x1xf32>,
    return
  }
  func.func @transform_0(%arg0: i32) -> (i32, i32) {
    %c0_i32 = arith.constant 0 : i32
    %c0_i32_0 = arith.constant 0 : i32
    return %arg0, %c0_i32 : i32, i32
  }
  func.func @transform_1(%arg0: i32) -> (i32, i32) {
    %c0_i32 = arith.constant 0 : i32
    %c0_i32_0 = arith.constant 0 : i32
    %c0_i32_1 = arith.constant 0 : i32
    return %c0_i32, %c0_i32_0 : i32, i32
  }
  func.func @transform_2(%arg0: i32) -> (i32, i32) {
    %c0_i32 = arith.constant 0 : i32
    %c0_i32_0 = arith.constant 0 : i32
    %c0_i32_1 = arith.constant 0 : i32
    return %c0_i32, %c0_i32_0 : i32, i32
  }
  func.func @transform_3(%arg0: i32) -> (i32, i32) {
    %c0_i32 = arith.constant 0 : i32
    %c0_i32_0 = arith.constant 0 : i32
    %c0_i32_1 = arith.constant 0 : i32
    return %c0_i32, %c0_i32_0 : i32, i32
  }
  func.func @transform_4(%arg0: i32) -> (i32, i32) {
    %c0_i32 = arith.constant 0 : i32
    %c0_i32_0 = arith.constant 0 : i32
    %c0_i32_1 = arith.constant 0 : i32
    return %c0_i32, %c0_i32_0 : i32, i32
  }
  func.func @transform_5(%arg0: i32) -> (i32, i32) {
    %c0_i32 = arith.constant 0 : i32
    %c0_i32_0 = arith.constant 0 : i32
    %c0_i32_1 = arith.constant 0 : i32
    return %c0_i32, %c0_i32_0 : i32, i32
  }
  func.func @transform_6(%arg0: i32) -> (i32, i32) {
    %c0_i32 = arith.constant 0 : i32
    %c0_i32_0 = arith.constant 0 : i32
    %c0_i32_1 = arith.constant 0 : i32
    return %c0_i32, %c0_i32_0 : i32, i32
  }
  func.func @transform_7(%arg0: i32) -> (i32, i32) {
    %c0_i32 = arith.constant 0 : i32
    %c0_i32_0 = arith.constant 0 : i32
    %c0_i32_1 = arith.constant 0 : i32
    return %c0_i32, %c0_i32_0 : i32, i32
  }
  func.func @transform_8(%arg0: i32) -> (i32, i32) {
    %c0_i32 = arith.constant 0 : i32
    %c0_i32_0 = arith.constant 0 : i32
    %c0_i32_1 = arith.constant 0 : i32
    return %c0_i32, %c0_i32_0 : i32, i32
  }
  func.func @transform_9(%arg0: i32) -> (i32, i32) {
    %c0_i32 = arith.constant 0 : i32
    %c0_i32_0 = arith.constant 0 : i32
    %c0_i32_1 = arith.constant 0 : i32
    return %c0_i32, %c0_i32_0 : i32, i32
  }
  func.func @transform_10(%arg0: i32) -> (i32, i32) {
    %c0_i32 = arith.constant 0 : i32
    %c0_i32_0 = arith.constant 0 : i32
    %c0_i32_1 = arith.constant 0 : i32
    return %c0_i32, %c0_i32_0 : i32, i32
  }
  func.func @transform_11(%arg0: i32) -> (i32, i32) {
    %c0_i32 = arith.constant 0 : i32
    %c0_i32_0 = arith.constant 0 : i32
    return %arg0, %c0_i32 : i32, i32
  }
}

</mosaic_0001>

<bundles_post_ra>
// kernel: net_forward.1
= control target key start
LH: loop header
LB: loop body
LE: loop exit
PB: predicated region body
PF: predicated region fallthrough
CT: control target
= control target key end

     0   :  { %s912_s0 = inlined_call_operand.vmem [shape: f32[8,1], index: 0, kind: input, shape index: {}]   ;;  %s913_s1 = inlined_call_operand.vmem [shape: f32[1,128], index: 1, kind: input, shape index: {}]   ;;  %s914_s2 = inlined_call_operand.vmem [shape: f32[1,128], index: 2, kind: input, shape index: {}]   ;;  %s915_s3 = inlined_call_operand.hbm [shape: bf16[128,128], index: 3, kind: input, shape index: {}]   ;;  %s916_s4 = inlined_call_operand.vmem [shape: f32[1,128], index: 4, kind: input, shape index: {}]   ;;  %s917_s5 = inlined_call_operand.hbm [shape: bf16[128,128], index: 5, kind: input, shape index: {}]   ;;  %s918_s6 = inlined_call_operand.vmem [shape: f32[1,128], index: 6, kind: input, shape index: {}]   ;;  %s919_s7 = inlined_call_operand.hbm [shape: bf16[128,128], index: 7, kind: input, shape index: {}]   ;;  %s920_s8 = inlined_call_operand.vmem [shape: f32[1,128], index: 8, kind: input, shape index: {}]   ;;  %s921_s9 = inlined_call_operand.vmem [shape: f32[1,128], index: 9, kind: input, shape index: {}]   ;;  %s922_s10 = inlined_call_operand.<no memory space> [shape: f32[1,1], index: 10, kind: input, shape index: {}]   ;;  %s923_s11 = inlined_call_operand.vmem [shape: f32[8,1], index: 11, kind: output, shape index: {}]  }
   0x1   :  { %v16_v0 = vstv %s922_s10 }
   0x2   :  { %17 = vst [vmem:[#allocation2] sm:$0x1] %v16_v0 }
   0x3   :  { %18 = vsyncpa [#allocation4], 0 }
   0x4   :  { %19 = vsyncpa [#allocation6], 0  ;;  %s735_s19 = smov [#allocation5]   ;;  %s736_s21 = smov [#allocation3]  }
   0x5   :  { %s45_s20 = sshll.u32 %s735_s19, 4  ;;  %s31_s22 = sshll.u32 %s736_s21, 4  ;;  %s46_s20 = int_to_ptr.vmem [resolvable:$true] %s45_s20  ;;  %s806_s22 = int_to_ptr.vmem [resolvable:$true] %s31_s22 }
   0x6   :  { %s665_s25 = scalar_lea.hbm %s917_s5, 1024 }
   0x7   :  { %p666_p0 = scmp.ne.s32.totalorder %s917_s5, %s665_s25  ;;  %p669_p1 = scmp.lt.u32.totalorder %s665_s25, %s917_s5 }
   0x9   :  { %p671_p2 = pnand %p669_p1, %p666_p0 }
   0xb   :  { %674 = shalt.err (!%p671_p2)
}
   0xc   :  { %s675_s29 = scalar_lea.vmem %s46_s20, 1024  ;;  %p680_p4 = scmp.lt.s32.totalorder %s46_s20, %s46_s20 }
   0xd   :  { %p676_p3 = scmp.ne.s32.totalorder %s46_s20, %s675_s29  ;;  %p681_p5 = scmp.lt.s32.totalorder %s675_s29, %s675_s29 }
   0xf   :  { %p682_p6 = por %p681_p5, %p680_p4 }
  0x11   :  { %p683_p7 = pnand %p682_p6, %p676_p3 }
  0x13   :  { %686 = shalt.err (!%p683_p7)
}
  0x14   :  { %s737_s30 = smov 64   ;;  %s738_s12 = smov 4  }
  0x15   :  { %51 = dma.hbm_to_vmem [thread:$0]  %s917_s5, 1024, %s46_s20, [#allocation6], %s737_s30, %s737_s30, %s738_s12  }
  0x16   :  { %s687_s17 = scalar_lea.hbm %s915_s3, 1024 }
  0x17   :  { %p688_p8 = scmp.ne.s32.totalorder %s915_s3, %s687_s17  ;;  %p691_p9 = scmp.lt.u32.totalorder %s687_s17, %s915_s3 }
  0x19   :  { %p693_p10 = pnand %p691_p9, %p688_p8 }
  0x1b   :  { %696 = shalt.err (!%p693_p10)
}
  0x1c   :  { %s697_s24 = scalar_lea.vmem %s806_s22, 1024  ;;  %p702_p12 = scmp.lt.s32.totalorder %s806_s22, %s806_s22 }
  0x1d   :  { %p698_p11 = scmp.ne.s32.totalorder %s806_s22, %s697_s24  ;;  %p703_p13 = scmp.lt.s32.totalorder %s697_s24, %s697_s24 }
  0x1f   :  { %p704_p0 = por %p703_p13, %p702_p12 }
  0x21   :  { %p705_p1 = pnand %p704_p0, %p698_p11 }
  0x23   :  { %708 = shalt.err (!%p705_p1)
}
  0x24   :  { %37 = dma.hbm_to_vmem [thread:$0]  %s915_s3, 1024, %s806_s22, [#allocation4], %s737_s30, %s737_s30, %s738_s12  }
  0x25   :  { %s739_s25 = smov [#allocation7]   ;;  %s709_s10 = scalar_lea.hbm %s919_s7, 1024 }
  0x26   :  { %s59_s26 = sshll.u32 %s739_s25, 4  ;;  %p710_p2 = scmp.ne.s32.totalorder %s919_s7, %s709_s10  ;;  %s60_s26 = int_to_ptr.vmem [resolvable:$true] %s59_s26 }
  0x27   :  { %p713_p3 = scmp.lt.u32.totalorder %s709_s10, %s919_s7 }
  0x29   :  { %p715_p4 = pnand %p713_p3, %p710_p2 }
  0x2b   :  { %718 = shalt.err (!%p715_p4)
}
  0x2c   :  { %s719_s16 = scalar_lea.vmem %s60_s26, 1024  ;;  %p724_p6 = scmp.lt.s32.totalorder %s60_s26, %s60_s26 }
  0x2d   :  { %p720_p5 = scmp.ne.s32.totalorder %s60_s26, %s719_s16  ;;  %p725_p7 = scmp.lt.s32.totalorder %s719_s16, %s719_s16 }
  0x2f   :  { %p726_p8 = por %p725_p7, %p724_p6 }
  0x31   :  { %p727_p9 = pnand %p726_p8, %p720_p5 }
  0x33   :  { %730 = shalt.err (!%p727_p9)
}
  0x34   :  { %65 = dma.hbm_to_vmem [thread:$0]  %s919_s7, 1024, %s60_s26, [#allocation6], %s737_s30, %s737_s30, %s738_s12  }
  0x35   :  { %731 = dma.done.wait [#allocation4], 1024  }
  0x36   :  { %732 = vsyncadd [#allocation4], 4294966272 }
  0x37   :  { %733 = dma.done.wait [#allocation6], 2048  }
  0x38   :  { %734 = vsyncadd [#allocation6], 4294965248  ;;  %v740_v1 = vmov 0   ;;  %v82_v2 = vld [vmem:[%s912_s0] sm:$0xff]  ;;  %v741_v4 = vmov 0.0   ;;  %v626_v5 = vld [vmem:[#allocation3 + $0x8] sm:$0xff]  }
  0x39   :  { %624 = vset.pattern.permute.xlu0 %v740_v1  ;;  %v625_v3 = vld [vmem:[#allocation3] sm:$0xff]   ;;  %556 = vmatprep.subr.bf16.mxu0 %v741_v4  ;;  %v627_v6 = vld [vmem:[#allocation3 + $0x10] sm:$0xff]   ;;  %v628_v7 = vld [vmem:[#allocation3 + $0x18] sm:$0xff]   ;;  %vm742_vm0 = vmmov 0   ;;  %vm486_vm1 = vcmask 7168  }
  0x3a   :  { %86 = vperm.xlu0 %624, %v82_v2   ;;  %576 = vmatprep.subr.bf16.mxu1 %v741_v4  ;;  %v629_v8 = vld [vmem:[#allocation3 + $0x20] sm:$0xff]   ;;  %v630_v9 = vld [vmem:[#allocation3 + $0x28] sm:$0xff]   ;;  %v631_v10 = vld [vmem:[#allocation3 + $0x30] sm:$0xff]  }
  0x3b   :  { %557 = vmatpush3.bf16.msra.mxu0 %v625_v3  ;;  %572 = vmatprep.mubr.msk.bf16.mxu0 %vm742_vm0, %v741_v4  ;;  %v632_v11 = vld [vmem:[#allocation3 + $0x38] sm:$0xff]   ;;  %v633_v23 = vld [vmem:[#allocation5] sm:$0xff]   ;;  %v634_v24 = vld [vmem:[#allocation5 + $0x8] sm:$0xff]  }
  0x3c   :  { %558 = vmatprep.subr.bf16.mxu0 %v741_v4  ;;  %592 = vmatprep.mubr.msk.bf16.mxu1 %vm742_vm0, %v741_v4  ;;  %v494_v12 = vld [vmem:[%s913_s1] ss:$0 sm:$0xff]  ;;  %v635_v25 = vld [vmem:[#allocation5 + $0x10] sm:$0xff]   ;;  %v637_v27 = vld [vmem:[#allocation5 + $0x20] sm:$0xff]  }
  0x3d   :  { %v495_v13 = vld [vmem:[%s914_s2] ss:$0 sm:$0xff]  ;;  %577 = vmatpush3.bf16.msra.mxu1 %v633_v23  ;;  %v638_v28 = vld [vmem:[#allocation5 + $0x28] sm:$0xff]   ;;  %v639_v29 = vld [vmem:[#allocation5 + $0x30] sm:$0xff]  }
  0x3e   :  { %578 = vmatprep.subr.bf16.mxu1 %v741_v4  ;;  %v636_v26 = vld [vmem:[#allocation5 + $0x18] sm:$0xff]   ;;  %v641_v43 = vld [vmem:[#allocation7] sm:$0xff]   ;;  %v642_v44 = vld [vmem:[#allocation7 + $0x8] sm:$0xff]  }
  0x3f   :  { %559 = vmatpush3.bf16.msra.mxu0 %v626_v5  ;;  %v640_v30 = vld [vmem:[#allocation5 + $0x38] sm:$0xff]   ;;  %v643_v45 = vld [vmem:[#allocation7 + $0x10] sm:$0xff]   ;;  %v645_v47 = vld [vmem:[#allocation7 + $0x20] sm:$0xff]  }
  0x40   :  { %560 = vmatprep.subr.bf16.mxu0 %v741_v4  ;;  %v497_v31 = vld [vmem:[%s916_s4] ss:$0 sm:$0xff]  ;;  %v646_v48 = vld [vmem:[#allocation7 + $0x28] sm:$0xff]   ;;  %v647_v49 = vld [vmem:[#allocation7 + $0x30] sm:$0xff]  }
  0x41   :  { %579 = vmatpush3.bf16.msra.mxu1 %v634_v24  ;;  %v644_v46 = vld [vmem:[#allocation7 + $0x18] sm:$0xff]  }
  0x42   :  { %580 = vmatprep.subr.bf16.mxu1 %v741_v4  ;;  %v648_v50 = vld [vmem:[#allocation7 + $0x38] sm:$0xff]  }
  0x43   :  { %561 = vmatpush3.bf16.msra.mxu0 %v627_v6  ;;  %v507_v51 = vld [vmem:[%s918_s6] ss:$0 sm:$0xff] }
  0x44   :  { %562 = vmatprep.subr.bf16.mxu0 %v741_v4  ;;  %v517_v63 = vld [vmem:[%s920_s8] ss:$0 sm:$0xff] }
  0x45   :  { %581 = vmatpush3.bf16.msra.mxu1 %v635_v25 }
  0x46   :  { %582 = vmatprep.subr.bf16.mxu1 %v741_v4 }
  0x47   :  { %563 = vmatpush3.bf16.msra.mxu0 %v628_v7 }
  0x48   :  { %564 = vmatprep.subr.bf16.mxu0 %v741_v4 }
  0x49   :  { %583 = vmatpush3.bf16.msra.mxu1 %v636_v26 }
  0x4a   :  { %584 = vmatprep.subr.bf16.mxu1 %v741_v4 }
  0x4b   :  { %565 = vmatpush3.bf16.msra.mxu0 %v629_v8 }
  0x4c   :  { %566 = vmatprep.subr.bf16.mxu0 %v741_v4 }
  0x4d   :  { %585 = vmatpush3.bf16.msra.mxu1 %v637_v27 }
  0x4e   :  { %586 = vmatprep.subr.bf16.mxu1 %v741_v4 }
  0x4f   :  { %567 = vmatpush3.bf16.msra.mxu0 %v630_v9  ;;  %v527_v9 = vld [vmem:[%s921_s9] ss:$0 sm:$0xff] }
  0x50   :  { %568 = vmatprep.subr.bf16.mxu0 %v741_v4 }
  0x51   :  { %587 = vmatpush3.bf16.msra.mxu1 %v638_v28 }
  0x52   :  { %588 = vmatprep.subr.bf16.mxu1 %v741_v4 }
  0x53   :  { %569 = vmatpush3.bf16.msra.mxu0 %v631_v10 }
  0x54   :  { %570 = vmatprep.subr.bf16.mxu0 %v741_v4 }
  0x55   :  { %589 = vmatpush3.bf16.msra.mxu1 %v639_v29 }
  0x56   :  { %590 = vmatprep.subr.bf16.mxu1 %v741_v4 }
  0x57   :  { %571 = vmatpush3.bf16.msra.mxu0 %v632_v11 }
  0x58   :  { %596 = vmatprep.subr.bf16.mxu0 %v741_v4 }
  0x59   :  { %591 = vmatpush3.bf16.msra.mxu1 %v640_v30 }
  0xb9   :  { %v87_v14 = vpop.permute.xlu0 %86 }
  0xba   :  { %v95_v15 = vmul.f32 %v494_v12, %v87_v14  ;;  %v528_v12 = vld [vmem:[#allocation2] ss:$0 sm:$0xff] }
  0xbc   :  { %v103_v16 = vadd.f32 %v495_v13, %v95_v15 }
  0xbe   :  { %v496_v17 = vmul.f32 -1.442695, %v103_v16 }
  0xc0   :  { %649 = vpow2.f32 %v496_v17 }
  0xca   :  { %v650_v18 = vpop.eup %649 }
  0xcb   :  { %v107_v19 = vadd.f32 1.0, %v650_v18 }
  0xcd   :  { %651 = vrcp.f32 %v107_v19 }
  0xd7   :  { %v652_v20 = vpop.eup %651 }
  0xd8   :  { %v110_v21 = vmul.f32 %v652_v20, %v103_v16 }
  0xda   :  { %v111_v22 = vpack.c.bf16 %v110_v21, %v110_v21 }
  0xdc   :  { %573 = vmatmul.mubr.bf16.vlgmr.msra.gmra.mrb[0].mxu0 %v111_v22 }
  0xdd   :  { %612 = vmatprep.mubr.msk.bf16.mxu0 %vm742_vm0, %v741_v4  ;;  %597 = vmatpush3.bf16.msra.mxu0 %v641_v43 }
  0xde   :  { %598 = vmatprep.subr.bf16.mxu0 %v741_v4 }
  0xe1   :  { %599 = vmatpush3.bf16.msra.mxu0 %v642_v44 }
  0xe2   :  { %600 = vmatprep.subr.bf16.mxu0 %v741_v4 }
  0xe5   :  { %601 = vmatpush3.bf16.msra.mxu0 %v643_v45 }
  0xe6   :  { %602 = vmatprep.subr.bf16.mxu0 %v741_v4 }
  0xe9   :  { %603 = vmatpush3.bf16.msra.mxu0 %v644_v46 }
  0xea   :  { %604 = vmatprep.subr.bf16.mxu0 %v741_v4 }
  0xed   :  { %605 = vmatpush3.bf16.msra.mxu0 %v645_v47 }
  0xee   :  { %606 = vmatprep.subr.bf16.mxu0 %v741_v4 }
  0xf1   :  { %607 = vmatpush3.bf16.msra.mxu0 %v646_v48 }
  0xf2   :  { %608 = vmatprep.subr.bf16.mxu0 %v741_v4 }
  0xf5   :  { %609 = vmatpush3.bf16.msra.mxu0 %v647_v49 }
  0xf6   :  { %610 = vmatprep.subr.bf16.mxu0 %v741_v4 }
  0xf9   :  { %611 = vmatpush3.bf16.msra.mxu0 %v648_v50 }
 0x1af   :  { %v217_v32 = vpop.f32.mrb[0].mxu0 }
 0x1b0   :  { %v218_v33 = vadd.f32 %v497_v31, %v217_v32  ;;  %v574_v34 = vpop.f32.mrb[1].mxu0 }
 0x1b1   :  { %v220_v35 = vpop.f32.mrb[2].mxu0 }
 0x1b2   :  { %v506_v36 = vmul.f32 -1.442695, %v218_v33  ;;  %v575_v37 = vpop.f32.mrb[3].mxu0 }
 0x1b4   :  { %653 = vpow2.f32 %v506_v36 }
 0x1be   :  { %v654_v38 = vpop.eup %653 }
 0x1bf   :  { %v226_v39 = vadd.f32 1.0, %v654_v38 }
 0x1c1   :  { %655 = vrcp.f32 %v226_v39 }
 0x1cb   :  { %v656_v40 = vpop.eup %655 }
 0x1cc   :  { %v229_v41 = vmul.f32 %v656_v40, %v218_v33 }
 0x1ce   :  { %v230_v42 = vpack.c.bf16 %v229_v41, %v229_v41 }
 0x1d0   :  { %593 = vmatmul.mubr.bf16.vlgmr.msra.gmra.mrb[0].mxu1 %v230_v42 }
 0x2a3   :  { %v336_v52 = vpop.f32.mrb[0].mxu1 }
 0x2a4   :  { %v337_v53 = vadd.f32 %v507_v51, %v336_v52  ;;  %v594_v54 = vpop.f32.mrb[1].mxu1 }
 0x2a5   :  { %v339_v55 = vpop.f32.mrb[2].mxu1 }
 0x2a6   :  { %v516_v56 = vmul.f32 -1.442695, %v337_v53  ;;  %v595_v57 = vpop.f32.mrb[3].mxu1 }
 0x2a8   :  { %657 = vpow2.f32 %v516_v56 }
 0x2b2   :  { %v658_v58 = vpop.eup %657 }
 0x2b3   :  { %v345_v59 = vadd.f32 1.0, %v658_v58 }
 0x2b5   :  { %659 = vrcp.f32 %v345_v59 }
 0x2bf   :  { %v660_v60 = vpop.eup %659 }
 0x2c0   :  { %v348_v61 = vmul.f32 %v660_v60, %v337_v53 }
 0x2c2   :  { %v349_v62 = vpack.c.bf16 %v348_v61, %v348_v61 }
 0x2c4   :  { %613 = vmatmul.mubr.bf16.vlgmr.msra.gmra.mrb[4].mxu0 %v349_v62 }
 0x397   :  { %v455_v0 = vpop.f32.mrb[4].mxu0 }
 0x398   :  { %v456_v1 = vadd.f32 %v517_v63, %v455_v0  ;;  %v614_v2 = vpop.f32.mrb[5].mxu0 }
 0x399   :  { %v458_v3 = vpop.f32.mrb[6].mxu0 }
 0x39a   :  { %v526_v4 = vmul.f32 -1.442695, %v456_v1  ;;  %v615_v5 = vpop.f32.mrb[7].mxu0 }
 0x39c   :  { %661 = vpow2.f32 %v526_v4 }
 0x3a6   :  { %v662_v6 = vpop.eup %661 }
 0x3a7   :  { %v464_v7 = vadd.f32 1.0, %v662_v6 }
 0x3a9   :  { %663 = vrcp.f32 %v464_v7 }
 0x3b3   :  { %v664_v8 = vpop.eup %663 }
 0x3b4   :  { %v467_v10 = vmul.f32 %v664_v8, %v456_v1 }
 0x3b6   :  { %v475_v11 = vmul.f32 %v527_v9, %v467_v10 }
 0x3b8   :  { %476 = vadd.xlane.f32.xlu0 %v475_v11 }
 0x445   :  { %v477_v13 = vpop.xlane.xlu0 %476 }
 0x446   :  { %v485_v14 = vadd.f32 %v528_v12, %v477_v13 }
 0x448   :  { %487 = vst.msk [vmem:[%s923_s11] sm:$0xff] %vm486_vm1, %v485_v14 }
 0x449   :  { %492 = vsyncpa [#allocation4], 1 }
 0x44a   :  { %493 = vsyncpa [#allocation6], 1 }

</bundles_post_ra>
